<compile_context>
chip_gen: v7x
topology: tpu7x:2x2x1
jax: 0.10.0
libtpu: 0.0.40
codegen_flags: <defaults>
</compile_context>

<pallas_src>
import math
import functools

import jax
import jax.numpy as jnp
from jax import lax
from jax.experimental import pallas as pl
from jax.experimental.pallas import tpu as pltpu


def _round_up(x, m):
    return (x + m - 1) // m * m


@functools.lru_cache(maxsize=1)
def _vmem_capacity_bytes():
    """Per-TensorCore VMEM capacity; conservative (v7x) fallback."""
    try:
        return int(pltpu.get_tpu_info().vmem_capacity_bytes)
    except Exception:
        return 64 << 20


def _gelu(h, approximate):
    if approximate:
        # tanh form -> routes the transcendental to the (otherwise idle) EUP.
        return jax.nn.gelu(h, approximate=True)
    # exact erf form -- matches torch.nn.GELU() default.
    return 0.5 * h * (1.0 + lax.erf(h * (1.0 / math.sqrt(2.0))))


# ---------------------------------------------------------------------------
# Kernels
# ---------------------------------------------------------------------------
def _mlp_kernel_resident(x_ref, w1_ref, b1_ref, w2_ref, b2_ref, o_ref, *,
                         approximate_gelu):
    # x_ref: (tm, D_in)   w1_ref: (D_in, H_p)   b1_ref: (1, H_p)
    # w2_ref: (H_p, D_out_p)  b2_ref: (1, D_out_p)  o_ref: (tm, D_out_p)
    # Align x to the weight dtype (no-op for f32; intended bf16 quantization
    # when mxu_dtype=bf16), keep f32 accumulation on the MXU.
    x = x_ref[...].astype(w1_ref.dtype)
    h = jnp.dot(x, w1_ref[...], preferred_element_type=jnp.float32)
    h = h + b1_ref[...].astype(jnp.float32)
    h = _gelu(h, approximate_gelu)
    # dropout p=0.0 => identity.
    h = h.astype(w2_ref.dtype)  # intentional operand quantization for the MXU
    o = jnp.dot(h, w2_ref[...], preferred_element_type=jnp.float32)
    o = o + b2_ref[...].astype(jnp.float32)
    o_ref[...] = o.astype(o_ref.dtype)


def _mlp_kernel_htiled(x_ref, w1_ref, b1_ref, w2_ref, b2_ref, o_ref, acc_ref, *,
                       approximate_gelu):
    # Grid = (row tiles, H tiles); H axis last + "arbitrary".
    # x_ref: (tm, D_in)  w1_ref: (D_in, th)  b1_ref: (1, th)
    # w2_ref: (th, D_out_p)  b2_ref: (1, D_out_p)
    # o_ref: (tm, D_out_p)   acc_ref: (tm, D_out_p) f32 scratch
    j = pl.program_id(1)

    @pl.when(j == 0)
    def _():
        acc_ref[...] = jnp.zeros_like(acc_ref)

    x = x_ref[...].astype(w1_ref.dtype)
    h = jnp.dot(x, w1_ref[...], preferred_element_type=jnp.float32)
    h = h + b1_ref[...].astype(jnp.float32)
    h = _gelu(h, approximate_gelu)          # elementwise over H -> safe to tile
    h = h.astype(w2_ref.dtype)
    acc_ref[...] += jnp.dot(h, w2_ref[...], preferred_element_type=jnp.float32)

    @pl.when(j == pl.num_programs(1) - 1)
    def _():
        o = acc_ref[...] + b2_ref[...].astype(jnp.float32)
        o_ref[...] = o.astype(o_ref.dtype)


# ---------------------------------------------------------------------------
# Wrapper
# ---------------------------------------------------------------------------
@functools.partial(
    jax.jit,
    static_argnames=("tm", "th", "mxu_dtype", "approximate_gelu",
                     "force_h_tiled"))
def mlp_pallas(x, w1, b1, w2, b2, *, tm=512, th=512, mxu_dtype=None,
               approximate_gelu=False, force_h_tiled=False):
    """x: (B, N, D_in) -> (B, N, D_out).

    w1: (D_in, H), b1: (1, H), w2: (H, D_out), b2: (1, D_out)
    (weights stored transposed relative to torch's (out, in) layout).
    mxu_dtype: optional MXU operand dtype (e.g. jnp.bfloat16) -- f32
    accumulation is kept regardless.
    """
    B, N, D_in = x.shape
    H = w1.shape[1]
    D_out = w2.shape[1]
    M = B * N

    w_dtype = jnp.dtype(mxu_dtype) if mxu_dtype is not None else jnp.dtype(w1.dtype)

    # Lane-dense padding of hidden / output feature dims (weights only; padded
    # once -- no extra HBM pass over the activations, which keep their D_in).
    H_p = _round_up(H, 128)
    D_out_p = _round_up(D_out, 128)

    # Row tile: multiple of 8 (sublane); don't over-pad tiny problems.
    tm = max(8, min(tm, _round_up(M, 8)))
    # Keep >= 2 grid steps for non-trivial M so dimension_semantics=("parallel",)
    # can shard the row axis across v7x's 2 TensorCores.
    if M >= 256 and _round_up(M, tm) // tm < 2:
        tm = _round_up(-(-M // 2), 8)
    M_p = _round_up(M, tm)

    x2 = x.reshape(M, D_in)
    if M_p != M:
        x2 = jnp.pad(x2, ((0, M_p - M), (0, 0)))
    w1p = jnp.pad(w1, ((0, 0), (0, H_p - H))).astype(w_dtype)
    b1p = jnp.pad(b1, ((0, 0), (0, H_p - H)))                 # biases stay f32
    w2p = jnp.pad(w2, ((0, H_p - H), (0, D_out_p - D_out))).astype(w_dtype)
    b2p = jnp.pad(b2, ((0, 0), (0, D_out_p - D_out)))

    cap = _vmem_capacity_bytes()
    limit_hi = max(cap - (8 << 20), 32 << 20)
    xb = jnp.dtype(x.dtype).itemsize
    wb = jnp.dtype(w_dtype).itemsize
    bb = jnp.dtype(b1.dtype).itemsize

    # Single-buffered resident weight footprint (Buffered(1) on those specs).
    w_res_bytes = (D_in * H_p + H_p * D_out_p) * wb + (H_p + D_out_p) * bb
    use_h_tiled = force_h_tiled or (w_res_bytes > cap // 2)

    flops = 2 * M_p * (D_in * H_p + H_p * D_out_p)
    transc = M_p * H_p

    if not use_h_tiled:
        # ------------------- resident-weight path --------------------------
        tile_bytes = 2 * tm * (D_in + D_out_p) * xb        # double-buffered x/out
        inter_bytes = tm * (H_p + D_out_p) * 4             # f32 intermediates
        est = w_res_bytes + tile_bytes + inter_bytes + (4 << 20)
        vmem_limit = int(min(max(est, 32 << 20), limit_hi))

        cost = pl.CostEstimate(
            flops=flops, transcendentals=transc,
            bytes_accessed=M_p * (D_in + D_out_p) * xb + w_res_bytes)

        kernel = functools.partial(_mlp_kernel_resident,
                                   approximate_gelu=approximate_gelu)
        out2 = pl.pallas_call(
            kernel,
            out_shape=jax.ShapeDtypeStruct((M_p, D_out_p), x.dtype),
            grid_spec=pltpu.PrefetchScalarGridSpec(
                num_scalar_prefetch=0,
                grid=(M_p // tm,),
                in_specs=[
                    pl.BlockSpec((tm, D_in), lambda i: (i, 0)),      # x row tile
                    pl.BlockSpec((D_in, H_p), lambda i: (0, 0),      # w1 resident
                                 pipeline_mode=pl.Buffered(1)),
                    pl.BlockSpec((1, H_p), lambda i: (0, 0),         # b1 resident
                                 pipeline_mode=pl.Buffered(1)),
                    pl.BlockSpec((H_p, D_out_p), lambda i: (0, 0),   # w2 resident
                                 pipeline_mode=pl.Buffered(1)),
                    pl.BlockSpec((1, D_out_p), lambda i: (0, 0),     # b2 resident
                                 pipeline_mode=pl.Buffered(1)),
                ],
                out_specs=pl.BlockSpec((tm, D_out_p), lambda i: (i, 0)),
            ),
            compiler_params=pltpu.CompilerParams(
                dimension_semantics=("parallel",),
                vmem_limit_bytes=vmem_limit,
            ),
            cost_estimate=cost,
        )(x2, w1p, b1p, w2p, b2p)
    else:
        # ------------------- H-tiled reduction path ------------------------
        th = max(128, min(_round_up(th, 128), H_p))
        while H_p % th != 0:                     # th must evenly tile H_p
            th -= 128
        n_h = H_p // th

        tile_bytes = 2 * tm * (D_in + D_out_p) * xb
        w_tile_bytes = 2 * ((D_in * th + th * D_out_p) * wb + th * bb) \
            + D_out_p * bb
        acc_bytes = tm * D_out_p * 4
        inter_bytes = tm * th * 4
        est = w_tile_bytes + tile_bytes + acc_bytes + inter_bytes + (4 << 20)
        vmem_limit = int(min(max(est, 32 << 20), limit_hi))

        cost = pl.CostEstimate(
            flops=flops, transcendentals=transc,
            bytes_accessed=(M_p * (D_in + D_out_p) * xb
                            + (M_p // tm) * w_res_bytes))

        kernel = functools.partial(_mlp_kernel_htiled,
                                   approximate_gelu=approximate_gelu)
        out2 = pl.pallas_call(
            kernel,
            out_shape=jax.ShapeDtypeStruct((M_p, D_out_p), x.dtype),
            grid_spec=pltpu.PrefetchScalarGridSpec(
                num_scalar_prefetch=0,
                grid=(M_p // tm, n_h),
                in_specs=[
                    pl.BlockSpec((tm, D_in), lambda i, j: (i, 0)),
                    pl.BlockSpec((D_in, th), lambda i, j: (0, j)),   # w1 H-tile
                    pl.BlockSpec((1, th), lambda i, j: (0, j)),      # b1 H-tile
                    pl.BlockSpec((th, D_out_p), lambda i, j: (j, 0)),  # w2 H-tile
                    pl.BlockSpec((1, D_out_p), lambda i, j: (0, 0),
                                 pipeline_mode=pl.Buffered(1)),      # b2 resident
                ],
                out_specs=pl.BlockSpec((tm, D_out_p), lambda i, j: (i, 0)),
                scratch_shapes=[pltpu.VMEM((tm, D_out_p), jnp.float32)],
            ),
            compiler_params=pltpu.CompilerParams(
                dimension_semantics=("parallel", "arbitrary"),
                vmem_limit_bytes=vmem_limit,
            ),
            cost_estimate=cost,
        )(x2, w1p, b1p, w2p, b2p)

    if M_p != M or D_out_p != D_out:
        out2 = out2[:M, :D_out]
    return out2.reshape(B, N, D_out)


# ---------------------------------------------------------------------------
# Parameter init (nn.Linear-style) and pure-JAX reference
# ---------------------------------------------------------------------------
def init_mlp_params(key, in_features, hidden_features=None, out_features=None,
                    dtype=jnp.float32):
    """nn.Linear-style init: U(-1/sqrt(fan_in), 1/sqrt(fan_in))."""
    out_features = out_features or in_features
    hidden_features = hidden_features or in_features
    k1, k2, k3, k4 = jax.random.split(key, 4)

    bound1 = 1.0 / math.sqrt(in_features)
    # stored (in, out) so the kernel computes x @ W  (== x @ W_torch.T)
    w1 = jax.random.uniform(k1, (in_features, hidden_features),
                            minval=-bound1, maxval=bound1, dtype=dtype)
    b1 = jax.random.uniform(k2, (1, hidden_features),
                            minval=-bound1, maxval=bound1, dtype=dtype)

    bound2 = 1.0 / math.sqrt(hidden_features)
    w2 = jax.random.uniform(k3, (hidden_features, out_features),
                            minval=-bound2, maxval=bound2, dtype=dtype)
    b2 = jax.random.uniform(k4, (1, out_features),
                            minval=-bound2, maxval=bound2, dtype=dtype)
    return w1, b1, w2, b2


def mlp_reference(x, w1, b1, w2, b2):
    h = x @ w1 + b1
    h = 0.5 * h * (1.0 + lax.erf(h / jnp.sqrt(2.0)))
    return h @ w2 + b2


if __name__ == "__main__":
    key = jax.random.PRNGKey(0)
    k_x, k_p = jax.random.split(key)

    B, N = 2, 8              # batch, sequence
    in_features = 32
    hidden_features = 256
    out_features = 32

    x = jax.random.normal(k_x, (B, N, in_features), dtype=jnp.float32)
    w1, b1, w2, b2 = init_mlp_params(k_p, in_features, hidden_features,
                                     out_features)

    ref = mlp_reference(x.reshape(B * N, in_features), w1, b1, w2, b2)
    ref = ref.reshape(B, N, out_features)

    # 1) Exact path: f32 MXU operands, VMEM-resident single-buffered weights.
    out = jax.block_until_ready(mlp_pallas(x, w1, b1, w2, b2))
    assert out.shape == (B, N, out_features)
    assert jnp.allclose(out, ref, atol=2e-5, rtol=2e-5)

    # 2) bf16 MXU operands (perf path for bf16-native MXUs); f32 accumulation.
    out_bf16 = jax.block_until_ready(
        mlp_pallas(x, w1, b1, w2, b2, mxu_dtype=jnp.bfloat16))
    assert jnp.allclose(out_bf16, ref, atol=5e-2, rtol=5e-2)

    # 3) H-tiled reduction path (auto-selected for transformer-sized H; forced
    #    here at small shape to exercise the accumulator / pl.when logic).
    out_ht = jax.block_until_ready(
        mlp_pallas(x, w1, b1, w2, b2, th=128, force_h_tiled=True))
    assert jnp.allclose(out_ht, ref, atol=2e-5, rtol=2e-5)

    print("KERNEL_OK")
</pallas_src>

<mosaic_0001>
module attributes {stable_mosaic.version = 11 : i64} {
  func.func @_mlp_kernel_resident(%arg0: i32, %arg1: memref<16x32xf32, #tpu.memory_space<vmem>>, %arg2: memref<32x256xf32, #tpu.memory_space<vmem>>, %arg3: memref<1x256xf32, #tpu.memory_space<vmem>>, %arg4: memref<256x128xf32, #tpu.memory_space<vmem>>, %arg5: memref<1x128xf32, #tpu.memory_space<vmem>>, %arg6: memref<16x128xf32, #tpu.memory_space<vmem>>) attributes {dimension_semantics = [#tpu.dimension_semantics<parallel>], iteration_bounds = array<i64: 1>, scalar_prefetch = 0 : i64, scratch_operands = 0 : i64, tpu.core_type = #tpu.core_type<tc>, window_params = [{transform_indices = @transform_0, window_bounds = array<i64: 16, 32>}, {pipeline_mode = #tpu.pipeline_mode<synchronous>, transform_indices = @transform_1, window_bounds = array<i64: 32, 256>}, {pipeline_mode = #tpu.pipeline_mode<synchronous>, transform_indices = @transform_2, window_bounds = array<i64: 1, 256>}, {pipeline_mode = #tpu.pipeline_mode<synchronous>, transform_indices = @transform_3, window_bounds = array<i64: 256, 128>}, {pipeline_mode = #tpu.pipeline_mode<synchronous>, transform_indices = @transform_4, window_bounds = array<i64: 1, 128>}, {transform_indices = @transform_5, window_bounds = array<i64: 16, 128>}]} {
    %c0 = arith.constant 0 : index
    %c0_0 = arith.constant 0 : index
    %0 = vector.load %arg1[%c0, %c0_0] : memref<16x32xf32, #tpu.memory_space<vmem>>, vector<16x32xf32>
    %c0_1 = arith.constant 0 : index
    %c0_2 = arith.constant 0 : index
    %1 = vector.load %arg2[%c0_1, %c0_2] : memref<32x256xf32, #tpu.memory_space<vmem>>, vector<32x256xf32>
    %cst = arith.constant dense<0.000000e+00> : vector<16x256xf32>
    %2 = tpu.matmul %0, %1, %cst {dimension_numbers = #tpu.dot_dimension_numbers<[1], [0], [0], [1], [0, 0, 1, 1], [], []>} : vector<16x32xf32>, vector<32x256xf32>, vector<16x256xf32> -> vector<16x256xf32>
    %c0_3 = arith.constant 0 : index
    %c0_4 = arith.constant 0 : index
    %3 = vector.load %arg3[%c0_3, %c0_4] : memref<1x256xf32, #tpu.memory_space<vmem>>, vector<1x256xf32>
    %4 = vector.broadcast %3 : vector<1x256xf32> to vector<16x256xf32>
    %5 = arith.addf %2, %4 : vector<16x256xf32>
    %cst_5 = arith.constant 5.000000e-01 : f32
    %6 = vector.broadcast %cst_5 : f32 to vector<16x256xf32>
    %7 = arith.mulf %6, %5 : vector<16x256xf32>
    %cst_6 = arith.constant 0.707106769 : f32
    %8 = vector.broadcast %cst_6 : f32 to vector<16x256xf32>
    %9 = arith.mulf %5, %8 : vector<16x256xf32>
    %10 = math.erf %9 : vector<16x256xf32>
    %cst_7 = arith.constant 1.000000e+00 : f32
    %11 = vector.broadcast %cst_7 : f32 to vector<16x256xf32>
    %12 = arith.addf %11, %10 : vector<16x256xf32>
    %13 = arith.mulf %7, %12 : vector<16x256xf32>
    %c0_8 = arith.constant 0 : index
    %c0_9 = arith.constant 0 : index
    %14 = vector.load %arg4[%c0_8, %c0_9] : memref<256x128xf32, #tpu.memory_space<vmem>>, vector<256x128xf32>
    %cst_10 = arith.constant dense<0.000000e+00> : vector<16x128xf32>
    %15 = tpu.matmul %13, %14, %cst_10 {dimension_numbers = #tpu.dot_dimension_numbers<[1], [0], [0], [1], [0, 0, 1, 1], [], []>} : vector<16x256xf32>, vector<256x128xf32>, vector<16x128xf32> -> vector<16x128xf32>
    %c0_11 = arith.constant 0 : index
    %c0_12 = arith.constant 0 : index
    %16 = vector.load %arg5[%c0_11, %c0_12] : memref<1x128xf32, #tpu.memory_space<vmem>>, vector<1x128xf32>
    %17 = vector.broadcast %16 : vector<1x128xf32> to vector<16x128xf32>
    %18 = arith.addf %15, %17 : vector<16x128xf32>
    %c0_13 = arith.constant 0 : index
    %c0_14 = arith.constant 0 : index
    %19 = vector.load %arg6[%c0_13, %c0_14] : memref<16x128xf32, #tpu.memory_space<vmem>>, vector<16x128xf32>
    tpu.vector_store %arg6[%c0_13, %c0_14], %18 {strides = array<i32>} : memref<16x128xf32, #tpu.memory_space<vmem>>, vector<16x128xf32>,
    return
  }
  func.func @transform_0(%arg0: i32) -> (i32, i32) {
    %c0_i32 = arith.constant 0 : i32
    %c0_i32_0 = arith.constant 0 : i32
    return %arg0, %c0_i32 : i32, i32
  }
  func.func @transform_1(%arg0: i32) -> (i32, i32) {
    %c0_i32 = arith.constant 0 : i32
    %c0_i32_0 = arith.constant 0 : i32
    %c0_i32_1 = arith.constant 0 : i32
    return %c0_i32, %c0_i32_0 : i32, i32
  }
  func.func @transform_2(%arg0: i32) -> (i32, i32) {
    %c0_i32 = arith.constant 0 : i32
    %c0_i32_0 = arith.constant 0 : i32
    %c0_i32_1 = arith.constant 0 : i32
    return %c0_i32, %c0_i32_0 : i32, i32
  }
  func.func @transform_3(%arg0: i32) -> (i32, i32) {
    %c0_i32 = arith.constant 0 : i32
    %c0_i32_0 = arith.constant 0 : i32
    %c0_i32_1 = arith.constant 0 : i32
    return %c0_i32, %c0_i32_0 : i32, i32
  }
  func.func @transform_4(%arg0: i32) -> (i32, i32) {
    %c0_i32 = arith.constant 0 : i32
    %c0_i32_0 = arith.constant 0 : i32
    %c0_i32_1 = arith.constant 0 : i32
    return %c0_i32, %c0_i32_0 : i32, i32
  }
  func.func @transform_5(%arg0: i32) -> (i32, i32) {
    %c0_i32 = arith.constant 0 : i32
    %c0_i32_0 = arith.constant 0 : i32
    return %arg0, %c0_i32 : i32, i32
  }
}

</mosaic_0001>

<bundles_post_ra>
// kernel: mlp_pallas.1
= control target key start
LH: loop header
LB: loop body
LE: loop exit
PB: predicated region body
PF: predicated region fallthrough
CT: control target
= control target key end

     0   :  { %v356_v3 = vmov 0.0   ;;  %vm42_vm0 = vcmask 261120   ;;  %v32_v63 = vlaneseq  ;;  %s525_s1 = inlined_call_operand.vmem [shape: f32[32,256], index: 1, kind: input, shape index: {}]   ;;  %s526_s3 = inlined_call_operand.vmem [shape: f32[256,128], index: 3, kind: input, shape index: {}]   ;;  %s527_s0 = inlined_call_operand.vmem [shape: f32[16,32], index: 0, kind: input, shape index: {}]   ;;  %s528_s2 = inlined_call_operand.vmem [shape: f32[1,256], index: 2, kind: input, shape index: {}]   ;;  %s529_s4 = inlined_call_operand.vmem [shape: f32[1,128], index: 4, kind: input, shape index: {}]   ;;  %s530_s5 = inlined_call_operand.vmem [shape: f32[16,128], index: 5, kind: output, shape index: {}]  }
   0x1   :  { %v23_v0 = vld [vmem:[%s525_s1 + $0x8] sm:$0xff]  ;;  %v25_v1 = vld [vmem:[%s525_s1 + $0x18] sm:$0xff]  ;;  %v22_v2 = vld [vmem:[%s525_s1] sm:$0xff]  ;;  %113 = vmatprep.mubr.f32.mxu0 %v356_v3 }
   0x2   :  { %v307_v4 = vpack.c.bf16 %v25_v1, %v23_v0  ;;  %v24_v5 = vld [vmem:[%s525_s1 + $0x10] sm:$0xff]  ;;  %v27_v6 = vld [vmem:[%s525_s1 + $0x28] sm:$0xff]  ;;  %v29_v7 = vld [vmem:[%s525_s1 + $0x38] sm:$0xff]  ;;  %v33_v0 = vshrl.u32 %v32_v63, 7 }
   0x3   :  { %v309_v8 = vpack.c.bf16 %v24_v5, %v22_v2  ;;  %v311_v9 = vpack.c.bf16 %v29_v7, %v27_v6  ;;  %v26_v10 = vld [vmem:[%s525_s1 + $0x20] sm:$0xff]  ;;  %v28_v11 = vld [vmem:[%s525_s1 + $0x30] sm:$0xff]  ;;  %v163_v13 = vld [vmem:[%s526_s3 + $0x88] sm:$0xff] }
   0x4   :  { %308 = vmatprep.subr.bf16.mxu0 %v307_v4  ;;  %v162_v12 = vld [vmem:[%s526_s3 + $0x80] sm:$0xff]  ;;  %v313_v14 = vpack.c.bf16 %v28_v11, %v26_v10  ;;  %v147_v17 = vld [vmem:[%s526_s3 + $0x8] sm:$0xff]  ;;  %v164_v18 = vld [vmem:[%s526_s3 + $0x90] sm:$0xff]  ;;  %v34_v1 = vsub.s32 0, %v33_v0 }
   0x5   :  { %310 = vmatpush1.bf16.msra.mxu0 %v309_v8  ;;  %v315_v15 = vpack.c.bf16 %v163_v13, %v162_v12  ;;  %v146_v16 = vld [vmem:[%s526_s3] sm:$0xff]  ;;  %v165_v20 = vld [vmem:[%s526_s3 + $0x98] sm:$0xff]  ;;  %v148_v21 = vld [vmem:[%s526_s3 + $0x10] sm:$0xff] }
   0x6   :  { %312 = vmatprep.subr.bf16.mxu0 %v311_v9  ;;  %v317_v19 = vpack.c.bf16 %v147_v17, %v146_v16  ;;  %v149_v22 = vld [vmem:[%s526_s3 + $0x18] sm:$0xff]  ;;  %v319_v23 = vpack.c.bf16 %v165_v20, %v164_v18  ;;  %v166_v24 = vld [vmem:[%s526_s3 + $0xa0] sm:$0xff]  ;;  %v167_v25 = vld [vmem:[%s526_s3 + $0xa8] sm:$0xff] }
   0x7   :  { %316 = vmatprep.subr.bf16.mxu1 %v315_v15  ;;  %v321_v26 = vpack.c.bf16 %v149_v22, %v148_v21  ;;  %v20_v27 = vld [vmem:[%s527_s0] sm:$0xff]  ;;  %v323_v28 = vpack.c.bf16 %v167_v25, %v166_v24  ;;  %v151_v30 = vld [vmem:[%s526_s3 + $0x28] sm:$0xff]  ;;  %v168_v33 = vld [vmem:[%s526_s3 + $0xb0] sm:$0xff] }
   0x8   :  { %318 = vmatpush3.bf16.msra.mxu1 %v317_v19  ;;  %v150_v29 = vld [vmem:[%s526_s3 + $0x20] sm:$0xff]  ;;  %v21_v32 = vld [vmem:[%s527_s0 + $0x8] sm:$0xff]  ;;  %v169_v34 = vld [vmem:[%s526_s3 + $0xb8] sm:$0xff] }
   0x9   :  { %314 = vmatpush1.bf16.msra.mxu0 %v313_v14  ;;  %320 = vmatprep.subr.bf16.mxu1 %v319_v23  ;;  %v325_v31 = vpack.c.bf16 %v151_v30, %v150_v29  ;;  %v327_v35 = vpack.c.bf16 %v169_v34, %v168_v33  ;;  %v152_v36 = vld [vmem:[%s526_s3 + $0x30] sm:$0xff]  ;;  %v153_v37 = vld [vmem:[%s526_s3 + $0x38] sm:$0xff]  ;;  %v170_v39 = vld [vmem:[%s526_s3 + $0xc0] sm:$0xff] }
   0xa   :  { %v329_v38 = vpack.c.bf16 %v153_v37, %v152_v36  ;;  %v171_v40 = vld [vmem:[%s526_s3 + $0xc8] sm:$0xff]  ;;  %v154_v42 = vld [vmem:[%s526_s3 + $0x40] sm:$0xff]  ;;  %v172_v45 = vld [vmem:[%s526_s3 + $0xd0] sm:$0xff] }
   0xb   :  { %v331_v41 = vpack.c.bf16 %v171_v40, %v170_v39  ;;  %v155_v43 = vld [vmem:[%s526_s3 + $0x48] sm:$0xff]  ;;  %v173_v46 = vld [vmem:[%s526_s3 + $0xd8] sm:$0xff]  ;;  %v156_v48 = vld [vmem:[%s526_s3 + $0x50] sm:$0xff] }
   0xc   :  { %266 = vmatmul.mubr.msk.f32.vlgmr.msra.gmra.mrb[0].mxu0 %vm42_vm0, %v20_v27  ;;  %322 = vmatpush3.bf16.msra.mxu1 %v321_v26  ;;  %v333_v44 = vpack.c.bf16 %v155_v43, %v154_v42  ;;  %v335_v47 = vpack.c.bf16 %v173_v46, %v172_v45  ;;  %v157_v49 = vld [vmem:[%s526_s3 + $0x58] sm:$0xff]  ;;  %v174_v51 = vld [vmem:[%s526_s3 + $0xe0] sm:$0xff]  ;;  %v175_v52 = vld [vmem:[%s526_s3 + $0xe8] sm:$0xff] }
   0xd   :  { %119 = vmatprep.mubr.f32.mxu0 %v356_v3  ;;  %324 = vmatprep.subr.bf16.mxu1 %v323_v28  ;;  %v337_v50 = vpack.c.bf16 %v157_v49, %v156_v48  ;;  %v339_v53 = vpack.c.bf16 %v175_v52, %v174_v51  ;;  %v158_v54 = vld [vmem:[%s526_s3 + $0x60] sm:$0xff]  ;;  %v159_v55 = vld [vmem:[%s526_s3 + $0x68] sm:$0xff]  ;;  %v176_v57 = vld [vmem:[%s526_s3 + $0xf0] sm:$0xff]  ;;  %v38_v3 = vsub.s32 1, %v33_v0 }
   0xe   :  { %v341_v56 = vpack.c.bf16 %v159_v55, %v158_v54  ;;  %v177_v58 = vld [vmem:[%s526_s3 + $0xf8] sm:$0xff]  ;;  %v160_v60 = vld [vmem:[%s526_s3 + $0x70] sm:$0xff]  ;;  %v30_v2 = vld [vmem:[%s528_s2] sm:$0x3] }
   0xf   :  { %v343_v59 = vpack.c.bf16 %v177_v58, %v176_v57  ;;  %v161_v61 = vld [vmem:[%s526_s3 + $0x78] sm:$0xff]  ;;  %v35_v4 = vrot.slane %v30_v2, %v34_v1  ;;  %v39_v5 = vrot.slane %v30_v2, %v38_v3 }
  0x10   :  { %267 = vmatmul.mubr.msk.f32.gmra.mrb[2].mxu0 %vm42_vm0, %v21_v32  ;;  %326 = vmatpush3.bf16.msra.mxu1 %v325_v31  ;;  %v345_v62 = vpack.c.bf16 %v161_v61, %v160_v60 }
  0x11   :  { %328 = vmatprep.subr.bf16.mxu1 %v327_v35  ;;  %v268_v35 = vld [vmem:[%s529_s4] ss:$0 sm:$0xff] }
  0x14   :  { %330 = vmatpush3.bf16.msra.mxu1 %v329_v38 }
  0x15   :  { %332 = vmatprep.subr.bf16.mxu1 %v331_v41 }
  0x18   :  { %334 = vmatpush3.bf16.msra.mxu1 %v333_v44 }
  0x19   :  { %336 = vmatprep.subr.bf16.mxu1 %v335_v47 }
  0x1c   :  { %338 = vmatpush3.bf16.msra.mxu1 %v337_v50 }
  0x1d   :  { %340 = vmatprep.subr.bf16.mxu1 %v339_v53 }
  0x20   :  { %342 = vmatpush3.bf16.msra.mxu1 %v341_v56 }
  0x21   :  { %344 = vmatprep.subr.bf16.mxu1 %v343_v59 }
  0x24   :  { %346 = vmatpush3.bf16.msra.mxu1 %v345_v62 }
  0xdf   :  { %v115_v6 = vpop.f32.mrb[0].mxu0 }
  0xe0   :  { %v116_v7 = vadd.f32 %v115_v6, %v35_v4  ;;  %v117_v8 = vpop.f32.mrb[1].mxu0 }
  0xe1   :  { %v118_v9 = vadd.f32 %v117_v8, %v39_v5 }
  0xe2   :  { %v130_v10 = vmul.f32 0.70710677, %v116_v7  ;;  %v126_v23 = vmul.f32 0.5, %v116_v7 }
  0xe3   :  { %v131_v11 = vmul.f32 0.70710677, %v118_v9  ;;  %v121_v12 = vpop.f32.mrb[2].mxu0  ;;  %v127_v21 = vmul.f32 0.5, %v118_v9 }
  0xe4   :  { %348 = verf.f32 %v130_v10  ;;  %v122_v13 = vadd.f32 %v121_v12, %v35_v4  ;;  %v123_v14 = vpop.f32.mrb[3].mxu0 }
  0xe5   :  { %350 = verf.f32 %v131_v11  ;;  %v124_v15 = vadd.f32 %v123_v14, %v39_v5 }
  0xe6   :  { %v132_v16 = vmul.f32 0.70710677, %v122_v13  ;;  %v128_v31 = vmul.f32 0.5, %v122_v13 }
  0xe7   :  { %v133_v17 = vmul.f32 0.70710677, %v124_v15  ;;  %v129_v29 = vmul.f32 0.5, %v124_v15 }
  0xe8   :  { %352 = verf.f32 %v132_v16 }
  0xe9   :  { %354 = verf.f32 %v133_v17 }
  0xee   :  { %v349_v18 = vpop.eup %348 }
  0xef   :  { %v351_v19 = vpop.eup %350  ;;  %v138_v20 = vadd.f32 1.0, %v349_v18 }
  0xf0   :  { %v139_v22 = vadd.f32 1.0, %v351_v19 }
  0xf1   :  { %v142_v28 = vmul.f32 %v138_v20, %v126_v23 }
  0xf2   :  { %v353_v24 = vpop.eup %352  ;;  %v143_v25 = vmul.f32 %v139_v22, %v127_v21 }
  0xf3   :  { %v355_v26 = vpop.eup %354  ;;  %v140_v27 = vadd.f32 1.0, %v353_v24 }
  0xf4   :  { %v141_v30 = vadd.f32 1.0, %v355_v26  ;;  %249 = vmatprep.mubr.f32.mxu1 %v143_v25 }
  0xf5   :  { %250 = vmatmul.mubr.f32.vlgmr.msra.gmra.mrb[0].mxu1 %v142_v28  ;;  %v144_v33 = vmul.f32 %v140_v27, %v128_v31 }
  0xf6   :  { %v145_v32 = vmul.f32 %v141_v30, %v129_v29 }
  0xf8   :  { %254 = vmatprep.mubr.f32.mxu1 %v145_v32 }
  0xf9   :  { %255 = vmatmul.mubr.f32.gmra.mrb[2].mxu1 %v144_v33 }
 0x1c8   :  { %v301_v34 = vpop.f32.mrb[0].mxu1 }
 0x1c9   :  { %v302_v36 = vpop.f32.mrb[1].mxu1 }
 0x1ca   :  { %v303_v37 = vadd.f32 %v302_v36, %v301_v34 }
 0x1cc   :  { %v252_v38 = vadd.f32 %v303_v37, %v268_v35  ;;  %v304_v39 = vpop.f32.mrb[2].mxu1 }
 0x1cd   :  { %v305_v40 = vpop.f32.mrb[3].mxu1 }
 0x1ce   :  { %260 = vst [vmem:[%s530_s5] sm:$0xff] %v252_v38  ;;  %v306_v41 = vadd.f32 %v305_v40, %v304_v39 }
 0x1d0   :  { %v257_v42 = vadd.f32 %v306_v41, %v268_v35 }
 0x1d2   :  { %261 = vst [vmem:[%s530_s5 + $0x8] sm:$0xff] %v257_v42 }

</bundles_post_ra>
